<compile_context>
chip_gen: v7x
topology: tpu7x:2x2x1
jax: 0.10.0
libtpu: 0.0.40
codegen_flags: <defaults>
</compile_context>

<pallas_src>
import functools

import jax
import jax.numpy as jnp
from jax.experimental import pallas as pl
from jax.experimental.pallas import tpu as pltpu


def _ctc_head_kernel(x_ref, w_ref, b_ref, o_ref):
    # x_ref: (TM, C_in)  w_ref: (C_in, C_out)  b_ref: (1, C_out)  o_ref: (TM, C_out)
    logits = jnp.dot(x_ref[...], w_ref[...],
                     preferred_element_type=jnp.float32)
    logits = logits + b_ref[...].astype(jnp.float32)      # broadcast (1, C_out)
    # numerically-stable softmax over the class (lane) axis, in f32
    m = jnp.max(logits, axis=-1, keepdims=True)
    e = jnp.exp(logits - m)
    s = jnp.sum(e, axis=-1, keepdims=True)
    o_ref[...] = (e * pl.reciprocal(s, approx=False)).astype(o_ref.dtype)


def _round_up(x, m):
    return ((x + m - 1) // m) * m


_VMEM_BUDGET_BYTES = 48 * 1024 * 1024   # conservative: fits v7x's 64 MiB VMEM
_VMEM_LIMIT_BYTES = 64 * 1024 * 1024    # raise the scoped default on v5e/v6e


def _choose_block_m(M, C_in, C_out, x_bytes, w_bytes, out_bytes, requested):
    """Largest row tile that fits the VMEM budget (double-buffered x/out/W)."""
    fixed = 2 * C_in * C_out * w_bytes + 2 * C_out * 4           # weight + bias
    per_row = 2 * C_in * x_bytes + 2 * C_out * out_bytes         # x + out tiles
    fit = max(8, (_VMEM_BUDGET_BYTES - fixed) // max(per_row, 1))
    tm = min(int(requested), int(fit), _round_up(M, 8))
    if tm >= 128:
        tm = (tm // 128) * 128      # MXU-friendly multiple of the 128-row dim
    else:
        tm = max(8, (tm // 8) * 8)  # at least a sublane multiple
    return tm


@functools.partial(jax.jit, static_argnames=("block_m",))
def ctc_head_forward(x, weight, bias, *, block_m=512):
    """x: (B, T, C_in); weight: (C_out, C_in) [torch layout]; bias: (C_out,)."""
    B, T, C_in = x.shape
    C_out = weight.shape[0]
    M = B * T

    out_dtype = x.dtype
    tm = _choose_block_m(M, C_in, C_out,
                         x.dtype.itemsize, weight.dtype.itemsize,
                         jnp.dtype(out_dtype).itemsize, block_m)

    x2 = x.reshape(M, C_in)          # contiguous reshape: no HBM copy
    w_t = weight.T                   # (C_in, C_out); tiny vs. x / output traffic
    b = bias.reshape(1, C_out)

    grid = (pl.cdiv(M, tm),)         # ragged last block handled by Pallas masking
    out = pl.pallas_call(
        _ctc_head_kernel,
        out_shape=jax.ShapeDtypeStruct((M, C_out), out_dtype),
        grid_spec=pltpu.PrefetchScalarGridSpec(
            num_scalar_prefetch=0,
            grid=grid,
            in_specs=[
                pl.BlockSpec((tm, C_in), lambda i: (i, 0)),
                pl.BlockSpec((C_in, C_out), lambda i: (0, 0)),   # grid-invariant
                pl.BlockSpec((1, C_out), lambda i: (0, 0)),      # grid-invariant
            ],
            out_specs=pl.BlockSpec((tm, C_out), lambda i: (i, 0)),
        ),
        compiler_params=pltpu.CompilerParams(
            dimension_semantics=("parallel",),
            vmem_limit_bytes=_VMEM_LIMIT_BYTES),
    )(x2, w_t, b)

    return out.reshape(B, T, C_out)  # contiguous reshape: no HBM copy


def _reference(x, weight, bias):
    logits = jnp.einsum("btc,oc->bto", x, weight) + bias
    return jax.nn.softmax(logits, axis=2)


if __name__ == "__main__":
    key = jax.random.PRNGKey(0)
    B, T, C_in, C_out = 2, 8, 32, 96   # small shapes consistent with CTCHead

    kx, kw, kb = jax.random.split(key, 3)
    x = jax.random.normal(kx, (B, T, C_in), dtype=jnp.float32)
    # deterministic "init": torch Linear weight layout (out_channels, in_channels)
    weight = jax.random.normal(kw, (C_out, C_in), dtype=jnp.float32) * 0.05
    bias = jax.random.normal(kb, (C_out,), dtype=jnp.float32) * 0.01

    out = ctc_head_forward(x, weight, bias)
    out = jax.block_until_ready(out)

    ref = _reference(x, weight, bias)
    assert out.shape == (B, T, C_out), out.shape
    assert jnp.allclose(out, ref, atol=1e-5, rtol=1e-5), float(
        jnp.max(jnp.abs(out - ref)))
    assert jnp.allclose(jnp.sum(out, axis=2), 1.0, atol=1e-5)

    print("KERNEL_OK")
</pallas_src>

<mosaic_0001>
module attributes {stable_mosaic.version = 11 : i64} {
  func.func @_ctc_head_kernel(%arg0: i32, %arg1: memref<16x32xf32, #tpu.memory_space<vmem>>, %arg2: memref<32x96xf32, #tpu.memory_space<vmem>>, %arg3: memref<1x96xf32, #tpu.memory_space<vmem>>, %arg4: memref<16x96xf32, #tpu.memory_space<vmem>>) attributes {dimension_semantics = [#tpu.dimension_semantics<parallel>], iteration_bounds = array<i64: 1>, scalar_prefetch = 0 : i64, scratch_operands = 0 : i64, tpu.core_type = #tpu.core_type<tc>, window_params = [{transform_indices = @transform_0, window_bounds = array<i64: 16, 32>}, {pipeline_mode = #tpu.pipeline_mode<synchronous>, transform_indices = @transform_1, window_bounds = array<i64: 32, 96>}, {pipeline_mode = #tpu.pipeline_mode<synchronous>, transform_indices = @transform_2, window_bounds = array<i64: 1, 96>}, {transform_indices = @transform_3, window_bounds = array<i64: 16, 96>}]} {
    %c0 = arith.constant 0 : index
    %c0_0 = arith.constant 0 : index
    %0 = vector.load %arg1[%c0, %c0_0] : memref<16x32xf32, #tpu.memory_space<vmem>>, vector<16x32xf32>
    %c0_1 = arith.constant 0 : index
    %c0_2 = arith.constant 0 : index
    %1 = vector.load %arg2[%c0_1, %c0_2] : memref<32x96xf32, #tpu.memory_space<vmem>>, vector<32x96xf32>
    %cst = arith.constant dense<0.000000e+00> : vector<16x96xf32>
    %2 = tpu.matmul %0, %1, %cst {dimension_numbers = #tpu.dot_dimension_numbers<[1], [0], [0], [1], [0, 0, 1, 1], [], []>} : vector<16x32xf32>, vector<32x96xf32>, vector<16x96xf32> -> vector<16x96xf32>
    %c0_3 = arith.constant 0 : index
    %c0_4 = arith.constant 0 : index
    %3 = vector.load %arg3[%c0_3, %c0_4] : memref<1x96xf32, #tpu.memory_space<vmem>>, vector<1x96xf32>
    %4 = vector.broadcast %3 : vector<1x96xf32> to vector<16x96xf32>
    %5 = arith.addf %2, %4 : vector<16x96xf32>
    %cst_5 = arith.constant dense<0xFF800000> : vector<16xf32>
    %6 = vector.multi_reduction <maximumf>, %5, %cst_5 [1] : vector<16x96xf32> to vector<16xf32>
    %7 = vector.shape_cast %6 : vector<16xf32> to vector<16x1xf32>
    %8 = vector.broadcast %7 : vector<16x1xf32> to vector<16x96xf32>
    %9 = arith.subf %5, %8 : vector<16x96xf32>
    %10 = math.exp %9 : vector<16x96xf32>
    %cst_6 = arith.constant dense<0.000000e+00> : vector<16xf32>
    %11 = vector.multi_reduction <add>, %10, %cst_6 [1] : vector<16x96xf32> to vector<16xf32>
    %12 = vector.shape_cast %11 : vector<16xf32> to vector<16x1xf32>
    %13 = tpu.reciprocal %12 : vector<16x1xf32> -> vector<16x1xf32>
    %14 = vector.broadcast %13 : vector<16x1xf32> to vector<16x96xf32>
    %15 = arith.mulf %10, %14 : vector<16x96xf32>
    %c0_7 = arith.constant 0 : index
    %c0_8 = arith.constant 0 : index
    %16 = vector.load %arg4[%c0_7, %c0_8] : memref<16x96xf32, #tpu.memory_space<vmem>>, vector<16x96xf32>
    tpu.vector_store %arg4[%c0_7, %c0_8], %15 {strides = array<i32>} : memref<16x96xf32, #tpu.memory_space<vmem>>, vector<16x96xf32>,
    return
  }
  func.func @transform_0(%arg0: i32) -> (i32, i32) {
    %c0_i32 = arith.constant 0 : i32
    %c0_i32_0 = arith.constant 0 : i32
    return %arg0, %c0_i32 : i32, i32
  }
  func.func @transform_1(%arg0: i32) -> (i32, i32) {
    %c0_i32 = arith.constant 0 : i32
    %c0_i32_0 = arith.constant 0 : i32
    %c0_i32_1 = arith.constant 0 : i32
    return %c0_i32, %c0_i32_0 : i32, i32
  }
  func.func @transform_2(%arg0: i32) -> (i32, i32) {
    %c0_i32 = arith.constant 0 : i32
    %c0_i32_0 = arith.constant 0 : i32
    %c0_i32_1 = arith.constant 0 : i32
    return %c0_i32, %c0_i32_0 : i32, i32
  }
  func.func @transform_3(%arg0: i32) -> (i32, i32) {
    %c0_i32 = arith.constant 0 : i32
    %c0_i32_0 = arith.constant 0 : i32
    return %arg0, %c0_i32 : i32, i32
  }
}

</mosaic_0001>

<bundles_post_ra>
// kernel: ctc_head_forward.1
= control target key start
LH: loop header
LB: loop body
LE: loop exit
PB: predicated region body
PF: predicated region fallthrough
CT: control target
= control target key end

     0   :  { %8 = vsyncpa [#allocation3], 0  ;;  %s424_s0 = inlined_call_operand.hbm [shape: f32[16,32], index: 0, kind: input, shape index: {}]   ;;  %s425_s1 = inlined_call_operand.hbm [shape: f32[32,96], index: 1, kind: input, shape index: {}]   ;;  %s426_s2 = inlined_call_operand.hbm [shape: f32[1,96], index: 2, kind: input, shape index: {}]   ;;  %s427_s3 = inlined_call_operand.hbm [shape: f32[16,96], index: 3, kind: output, shape index: {}]  }
   0x1   :  { %9 = vsyncpa [#allocation6], 0 }
   0x2   :  { %10 = vsyncpa [#allocation4], 0  ;;  %s328_s12 = smov [#allocation5]   ;;  %s329_s14 = smov [#allocation2]  }
   0x3   :  { %s28_s13 = sshll.u32 %s328_s12, 4  ;;  %s16_s15 = sshll.u32 %s329_s14, 4  ;;  %s29_s13 = int_to_ptr.vmem [resolvable:$true] %s28_s13  ;;  %s354_s15 = int_to_ptr.vmem [resolvable:$true] %s16_s15 }
   0x4   :  { %s234_s18 = scalar_lea.hbm %s425_s1, 512 }
   0x5   :  { %p235_p0 = scmp.ne.s32.totalorder %s425_s1, %s234_s18  ;;  %p238_p1 = scmp.lt.u32.totalorder %s234_s18, %s425_s1 }
   0x7   :  { %p240_p2 = pnand %p238_p1, %p235_p0 }
   0x9   :  { %243 = shalt.err (!%p240_p2)
}
   0xa   :  { %s244_s23 = scalar_lea.vmem %s29_s13, 512  ;;  %p249_p4 = scmp.lt.s32.totalorder %s29_s13, %s29_s13 }
   0xb   :  { %p245_p3 = scmp.ne.s32.totalorder %s29_s13, %s244_s23  ;;  %p250_p5 = scmp.lt.s32.totalorder %s244_s23, %s244_s23 }
   0xd   :  { %p251_p6 = por %p250_p5, %p249_p4 }
   0xf   :  { %p252_p7 = pnand %p251_p6, %p245_p3 }
  0x11   :  { %255 = shalt.err (!%p252_p7)
}
  0x12   :  { %s330_s24 = smov 128   ;;  %s331_s25 = smov 8  }
  0x13   :  { %34 = dma.hbm_to_vmem [thread:$0]  %s425_s1, 512, %s29_s13, [#allocation6], %s330_s24, %s330_s24, %s331_s25  }
  0x14   :  { %s256_s30 = scalar_lea.hbm %s424_s0, 256 }
  0x15   :  { %p257_p8 = scmp.ne.s32.totalorder %s424_s0, %s256_s30  ;;  %p260_p9 = scmp.lt.u32.totalorder %s256_s30, %s424_s0 }
  0x17   :  { %p262_p10 = pnand %p260_p9, %p257_p8 }
  0x19   :  { %265 = shalt.err (!%p262_p10)
}
  0x1a   :  { %s266_s8 = scalar_lea.vmem %s354_s15, 256  ;;  %p271_p12 = scmp.lt.s32.totalorder %s354_s15, %s354_s15 }
  0x1b   :  { %p267_p11 = scmp.ne.s32.totalorder %s354_s15, %s266_s8  ;;  %p272_p13 = scmp.lt.s32.totalorder %s266_s8, %s266_s8 }
  0x1d   :  { %p273_p0 = por %p272_p13, %p271_p12 }
  0x1f   :  { %p274_p1 = pnand %p273_p0, %p267_p11 }
  0x21   :  { %277 = shalt.err (!%p274_p1)
}
  0x22   :  { %22 = dma.hbm_to_vmem [thread:$0]  %s424_s0, 256, %s354_s15, [#allocation3], %s330_s24, %s330_s24, %s331_s25  }
  0x23   :  { %s332_s10 = smov [#allocation7]   ;;  %s278_s14 = scalar_lea.hbm %s426_s2, 16 }
  0x24   :  { %s41_s11 = sshll.u32 %s332_s10, 4  ;;  %p279_p2 = scmp.ne.s32.totalorder %s426_s2, %s278_s14  ;;  %s42_s11 = int_to_ptr.vmem [resolvable:$true] %s41_s11 }
  0x25   :  { %p282_p3 = scmp.lt.u32.totalorder %s278_s14, %s426_s2 }
  0x27   :  { %p284_p4 = pnand %p282_p3, %p279_p2 }
  0x29   :  { %287 = shalt.err (!%p284_p4)
}
  0x2a   :  { %s288_s20 = scalar_lea.vmem %s42_s11, 16  ;;  %s292_s0 = scalar_lea.vmem %s42_s11, 32 }
  0x2b   :  { %p289_p5 = scmp.ne.s32.totalorder %s42_s11, %s288_s20  ;;  %p293_p6 = scmp.lt.s32.totalorder %s42_s11, %s42_s11 }
  0x2c   :  { %p294_p7 = scmp.lt.s32.totalorder %s292_s0, %s288_s20 }
  0x2e   :  { %p295_p8 = por %p294_p7, %p293_p6 }
  0x30   :  { %p296_p9 = pnand %p295_p8, %p289_p5 }
  0x32   :  { %299 = shalt.err (!%p296_p9)
}
  0x33   :  { %44 = dma.hbm_to_vmem [thread:$0]  %s426_s2, 16, %s42_s11, [#allocation6]  }
  0x34   :  { %322 = dma.done.wait [#allocation3], 256  }
  0x35   :  { %323 = vsyncadd [#allocation3], 4294967040 }
  0x36   :  { %324 = dma.done.wait [#allocation6], 528  }
  0x37   :  { %325 = vsyncadd [#allocation6], 4294966768  ;;  %vm67_vm0 = vcmask 261120   ;;  %v56_v0 = vld [vmem:[#allocation5] sm:$0xff]  ;;  %v57_v1 = vld [vmem:[#allocation5 + $0x8] sm:$0xff]  ;;  %vm149_vm1 = vcmask 785408  }
  0x38   :  { %v58_v2 = vld [vmem:[#allocation5 + $0x10] sm:$0xff]  ;;  %v212_v3 = vpack.c.bf16 %v57_v1, %v56_v0  ;;  %v59_v4 = vld [vmem:[#allocation5 + $0x18] sm:$0xff]  ;;  %v192_v8 = vld [vmem:[#allocation7] ss:$0 sm:$0xff]  ;;  %s333_s2 = smov [#allocation8]  }
  0x39   :  { %v54_v5 = vld [vmem:[#allocation2] sm:$0xff]  ;;  %v216_v6 = vpack.c.bf16 %v59_v4, %v58_v2  ;;  %v55_v7 = vld [vmem:[#allocation2 + $0x8] sm:$0xff]  ;;  %s179_s22 = sshll.u32 %s333_s2, 4  ;;  %s180_s22 = int_to_ptr.vmem [resolvable:$true] %s179_s22 }
  0x3a   :  { %209 = vmatprep.mubr.msk.f32.mxu0 %vm67_vm0, %v54_v5  ;;  %213 = vmatprep.subr.bf16.mxu0 %v212_v3  ;;  %s300_s23 = scalar_lea.vmem %s180_s22, 256  ;;  %p305_p11 = scmp.lt.s32.totalorder %s180_s22, %s180_s22 }
  0x3b   :  { %215 = vmatpush3.bf16.msra.mxu0 %v212_v3  ;;  %p301_p10 = scmp.ne.s32.totalorder %s180_s22, %s300_s23  ;;  %p306_p12 = scmp.lt.s32.totalorder %s300_s23, %s300_s23 }
  0x3c   :  { %217 = vmatprep.subr.bf16.mxu0 %v216_v6 }
  0x3d   :  { %p307_p13 = por %p306_p12, %p305_p11 }
  0x3f   :  { %219 = vmatpush3.bf16.msra.mxu0 %v216_v6  ;;  %p308_p0 = pnand %p307_p13, %p301_p10 }
  0x42   :  { %210 = vmatmul.mubr.msk.f32.vlgmr.msra.gmra.mrb[0].mxu0 %vm67_vm0, %v55_v7 }
 0x115   :  { %v211_v9 = vpop.f32.mrb[0].mxu0 }
 0x116   :  { %v140_v10 = vpop.f32.mrb[1].mxu0  ;;  %v146_v12 = vadd.f32 %v211_v9, %v192_v8 }
 0x117   :  { %v141_v11 = vadd.f32 %v192_v8, %v140_v10 }
 0x118   :  { %v153_v14 = vsel %vm149_vm1, %v146_v12, -inf }
 0x119   :  { %v150_v13 = vsel %vm149_vm1, %v141_v11, -inf }
 0x11a   :  { %151 = vmax.xlane.f32.xlu0 %v150_v13 }
 0x11e   :  { %154 = vmax.xlane.f32.xlu0 %v153_v14 }
 0x1a7   :  { %v152_v15 = vpop.xlane.xlu0 %151 }
 0x1a8   :  { %v156_v16 = vsub.f32 %v141_v11, %v152_v15 }
 0x1aa   :  { %v158_v17 = vmul.f32 1.442695, %v156_v16 }
 0x1ab   :  { %v155_v18 = vpop.xlane.xlu0 %154 }
 0x1ac   :  { %226 = vpow2.f32 %v158_v17  ;;  %v157_v19 = vsub.f32 %v146_v12, %v155_v18 }
 0x1ae   :  { %v160_v20 = vmul.f32 1.442695, %v157_v19 }
 0x1b0   :  { %228 = vpow2.f32 %v160_v20 }
 0x1b6   :  { %v227_v21 = vpop.eup %226 }
 0x1b7   :  { %v162_v22 = vsel %vm149_vm1, %v227_v21, 0.0 }
 0x1b8   :  { %163 = vadd.xlane.f32.xlu1 %v162_v22 }
 0x1ba   :  { %v229_v23 = vpop.eup %228 }
 0x1bb   :  { %v165_v24 = vsel %vm149_vm1, %v229_v23, 0.0 }
 0x1bc   :  { %166 = vadd.xlane.f32.xlu1 %v165_v24 }
 0x245   :  { %v164_v25 = vpop.xlane.xlu1 %163 }
 0x246   :  { %230 = vrcp.f32 %v164_v25 }
 0x249   :  { %v167_v26 = vpop.xlane.xlu1 %166 }
 0x24a   :  { %232 = vrcp.f32 %v167_v26 }
 0x250   :  { %v231_v27 = vpop.eup %230 }
 0x251   :  { %v170_v28 = vmul.f32 %v231_v27, %v227_v21 }
 0x253   :  { %172 = vst.msk [vmem:[#allocation8] sm:$0xff] %vm149_vm1, %v170_v28 }
 0x254   :  { %v233_v29 = vpop.eup %232 }
 0x255   :  { %v171_v30 = vmul.f32 %v233_v29, %v229_v23 }
 0x257   :  { %173 = vst.msk [vmem:[#allocation8 + $0x8] sm:$0xff] %vm149_vm1, %v171_v30 }
 0x258   :  { %311 = shalt.err (!%p308_p0)
}
 0x259   :  { %s312_s28 = scalar_lea.hbm %s427_s3, 256 }
 0x25a   :  { %p313_p1 = scmp.ne.s32.totalorder %s427_s3, %s312_s28  ;;  %p316_p2 = scmp.lt.u32.totalorder %s312_s28, %s427_s3 }
 0x25c   :  { %p318_p3 = pnand %p316_p2, %p313_p1 }
 0x25e   :  { %321 = shalt.err (!%p318_p3)
}
 0x25f   :  { %185 = dma.vmem_to_hbm [thread:$0]  %s180_s22, 256, %s427_s3, [#allocation4], %s330_s24, %s330_s24, %s331_s25  }
 0x260   :  { %326 = dma.done.wait [#allocation4], 256  }
 0x261   :  { %327 = vsyncadd [#allocation4], 4294967040 }
 0x262   :  { %189 = vsyncpa [#allocation3], 1 }
 0x263   :  { %190 = vsyncpa [#allocation6], 1 }
 0x264   :  { %191 = vsyncpa [#allocation4], 1 }

</bundles_post_ra>
